<compile_context>
chip_gen: v7x
topology: tpu7x:2x2x1
jax: 0.10.0
libtpu: 0.0.40
codegen_flags: <defaults>
</compile_context>

<pallas_src>
import functools

import jax
import jax.numpy as jnp
from jax.experimental import pallas as pl
from jax.experimental.pallas import tpu as pltpu

LANE = 128
SUBLANE = 8


def _round_up(n, m):
    return (n + m - 1) // m * m


def _pad2(a, rows, cols, value=0.0):
    return jnp.pad(
        a,
        ((0, rows - a.shape[0]), (0, cols - a.shape[1])),
        constant_values=value,
    )


def mlp_kernel(x_ref, w1_ref, b1_ref, w2_ref, b2_ref, w3_ref, b3_ref,
               w4_ref, b4_ref, o_ref):
    # Dot operands in bf16 (MXU), accumulation + all elementwise math in f32.
    x = x_ref[...].astype(jnp.bfloat16)

    # fc1 + relu
    h = jnp.dot(x, w1_ref[...], preferred_element_type=jnp.float32) + b1_ref[...]
    h = jnp.maximum(h, 0.0)
    # fc2 + relu
    h = jnp.dot(h.astype(jnp.bfloat16), w2_ref[...],
                preferred_element_type=jnp.float32) + b2_ref[...]
    h = jnp.maximum(h, 0.0)
    # fc3 + relu
    h = jnp.dot(h.astype(jnp.bfloat16), w3_ref[...],
                preferred_element_type=jnp.float32) + b3_ref[...]
    h = jnp.maximum(h, 0.0)
    # fc4 (padded lanes carry bias = -1e30, added in f32 -> exp() underflows to 0)
    logits = jnp.dot(h.astype(jnp.bfloat16), w4_ref[...],
                     preferred_element_type=jnp.float32) + b4_ref[...]

    # Numerically stable softmax over the (padded) feature axis, all f32.
    m = jnp.max(logits, axis=-1, keepdims=True)
    e = jnp.exp(logits - m)
    denom = jnp.sum(e, axis=-1, keepdims=True)
    # Exact divide (approx reciprocal previously broke the row-sum tolerance).
    o_ref[...] = (e / denom).astype(o_ref.dtype)


def prepare_params(params):
    """Pad to lane-aligned shapes and cast weights to bf16 ONCE, outside the fwd path."""
    input_dim, hidden_dim = params["w1"].shape
    output_dim = params["w4"].shape[1]
    hid_p = _round_up(hidden_dim, LANE)
    out_p = _round_up(output_dim, LANE)
    prep = {
        # x's feature axis stays unpadded, so w1 keeps its true row count (K = input_dim).
        "w1": _pad2(params["w1"], input_dim, hid_p).astype(jnp.bfloat16),
        "b1": _pad2(params["b1"], 1, hid_p),                       # f32
        "w2": _pad2(params["w2"], hid_p, hid_p).astype(jnp.bfloat16),
        "b2": _pad2(params["b2"], 1, hid_p),
        "w3": _pad2(params["w3"], hid_p, hid_p).astype(jnp.bfloat16),
        "b3": _pad2(params["b3"], 1, hid_p),
        "w4": _pad2(params["w4"], hid_p, out_p).astype(jnp.bfloat16),
        # Padded fc4 lanes get bias = -1e30 (f32) so padded logits vanish under softmax.
        "b4": _pad2(params["b4"], 1, out_p, value=-1e30),
    }
    return prep, output_dim


@functools.partial(jax.jit, static_argnames=("output_dim", "tm"))
def mlp_forward(x, prep, *, output_dim, tm=None):
    """x: [B, input_dim] float32; prep: output of prepare_params (padded, bf16 weights)."""
    B, input_dim = x.shape
    hid_p = prep["w1"].shape[1]
    out_p = prep["w4"].shape[1]

    if tm is None:
        # v6e/v7x MXU is 256 wide -> 256-row tiles at large B; v5e prefers 128.
        # Tiny batches just round up to a sublane multiple (toy-shape path).
        if B >= 256:
            tm = 256
        elif B >= 128:
            tm = 128
        else:
            tm = _round_up(B, SUBLANE)
    b_p = _round_up(B, tm)
    xp = x if b_p == B else jnp.pad(x, ((0, b_p - B), (0, 0)))

    # Resident (constant index-map) specs: weights/biases stay in VMEM across batch tiles.
    resident = lambda shape: pl.BlockSpec(shape, lambda i: (0, 0))

    # VMEM budget: weights/biases (default pipeliner double-buffers them), double-buffered
    # x/out tiles, activation temporaries, ~50% headroom.
    weight_bytes = sum(prep[k].size * prep[k].dtype.itemsize
                       for k in ("w1", "w2", "w3", "w4"))
    bias_bytes = sum(prep[k].size * prep[k].dtype.itemsize
                     for k in ("b1", "b2", "b3", "b4"))
    io_bytes = 2 * (tm * input_dim + tm * out_p) * 4
    act_bytes = 6 * tm * hid_p * 4
    vmem_limit = int(1.5 * (2 * (weight_bytes + bias_bytes) + io_bytes + act_bytes))
    vmem_limit = max(vmem_limit, 4 << 20)
    vmem_limit = min(vmem_limit, 96 << 20)

    cost = pl.CostEstimate(
        flops=2 * b_p * (input_dim * hid_p + 2 * hid_p * hid_p + hid_p * out_p),
        transcendentals=b_p * out_p,   # softmax exp
        bytes_accessed=xp.size * 4 + weight_bytes + bias_bytes + b_p * out_p * 4,
    )

    out_padded = pl.pallas_call(
        mlp_kernel,
        out_shape=jax.ShapeDtypeStruct((b_p, out_p), jnp.float32),
        grid_spec=pltpu.PrefetchScalarGridSpec(
            num_scalar_prefetch=0,
            grid=(b_p // tm,),
            in_specs=[
                pl.BlockSpec((tm, input_dim), lambda i: (i, 0)),   # x tile (pipelined)
                resident((input_dim, hid_p)), resident((1, hid_p)),
                resident((hid_p, hid_p)), resident((1, hid_p)),
                resident((hid_p, hid_p)), resident((1, hid_p)),
                resident((hid_p, out_p)), resident((1, out_p)),
            ],
            out_specs=pl.BlockSpec((tm, out_p), lambda i: (i, 0)),  # lane-dense store
        ),
        compiler_params=pltpu.CompilerParams(
            dimension_semantics=("parallel",),
            vmem_limit_bytes=vmem_limit,
        ),
        cost_estimate=cost,
    )(xp, prep["w1"], prep["b1"], prep["w2"], prep["b2"],
      prep["w3"], prep["b3"], prep["w4"], prep["b4"])

    # Strip batch/lane padding outside the kernel.
    return out_padded[:B, :output_dim]


def init_params(key, input_dim, hidden_dim, output_dim):
    """Deterministic init mimicking nn.Linear (uniform(-1/sqrt(fan_in), +1/sqrt(fan_in))).
    Weights stored transposed: [in_features, out_features]."""
    keys = jax.random.split(key, 8)

    def linear(kw, kb, fan_in, fan_out):
        bound = 1.0 / jnp.sqrt(fan_in)
        w = jax.random.uniform(kw, (fan_in, fan_out), jnp.float32, -bound, bound)
        b = jax.random.uniform(kb, (1, fan_out), jnp.float32, -bound, bound)
        return w, b

    w1, b1 = linear(keys[0], keys[1], input_dim, hidden_dim)
    w2, b2 = linear(keys[2], keys[3], hidden_dim, hidden_dim)
    w3, b3 = linear(keys[4], keys[5], hidden_dim, hidden_dim)
    w4, b4 = linear(keys[6], keys[7], hidden_dim, output_dim)
    return {"w1": w1, "b1": b1, "w2": w2, "b2": b2,
            "w3": w3, "b3": b3, "w4": w4, "b4": b4}


def mlp_reference_f32(x, p):
    h = jnp.maximum(x @ p["w1"] + p["b1"], 0.0)
    h = jnp.maximum(h @ p["w2"] + p["b2"], 0.0)
    h = jnp.maximum(h @ p["w3"] + p["b3"], 0.0)
    logits = h @ p["w4"] + p["b4"]
    return jax.nn.softmax(logits, axis=1)


def mlp_reference_bf16(x, p):
    """Same numerics as the kernel: bf16 dot operands, f32 accumulate/elementwise."""
    def dot(a, w):
        return jnp.dot(a.astype(jnp.bfloat16), w.astype(jnp.bfloat16),
                       preferred_element_type=jnp.float32)
    h = jnp.maximum(dot(x, p["w1"]) + p["b1"], 0.0)
    h = jnp.maximum(dot(h, p["w2"]) + p["b2"], 0.0)
    h = jnp.maximum(dot(h, p["w3"]) + p["b3"], 0.0)
    logits = dot(h, p["w4"]) + p["b4"]
    return jax.nn.softmax(logits, axis=1)


if __name__ == "__main__":
    batch, input_dim, hidden_dim, output_dim = 8, 16, 32, 8

    key = jax.random.PRNGKey(0)
    kx, kp = jax.random.split(key)
    x = jax.random.normal(kx, (batch, input_dim), jnp.float32)
    params = init_params(kp, input_dim, hidden_dim, output_dim)

    # Pad + bf16-cast weights once (outside the per-call forward path).
    prep, out_dim = prepare_params(params)

    out = mlp_forward(x, prep, output_dim=out_dim)
    out = jax.block_until_ready(out)
    assert out.shape == (batch, output_dim)

    # Exact-division softmax -> rows sum to 1 to f32 precision.
    row_sums = jnp.sum(out, axis=1)
    assert jnp.allclose(row_sums, 1.0, atol=1e-4), float(jnp.max(jnp.abs(row_sums - 1.0)))

    # Tight check against a reference using the same bf16-operand / f32-accumulate numerics.
    ref_bf16 = mlp_reference_bf16(x, params)
    err_bf16 = float(jnp.max(jnp.abs(out - ref_bf16)))
    assert err_bf16 < 2e-3, err_bf16

    # Loose check against the pure-f32 (PyTorch-equivalent) reference; the gap is just the
    # bf16 operand quantization requested by the perf review.
    ref_f32 = mlp_reference_f32(x, params)
    err_f32 = float(jnp.max(jnp.abs(out - ref_f32)))
    assert err_f32 < 2e-2, err_f32

    print("KERNEL_OK")
</pallas_src>

<mosaic_0001>
module attributes {stable_mosaic.version = 11 : i64} {
  func.func @mlp_kernel(%arg0: i32, %arg1: memref<8x16xf32, #tpu.memory_space<vmem>>, %arg2: memref<16x128xbf16, #tpu.memory_space<vmem>>, %arg3: memref<1x128xf32, #tpu.memory_space<vmem>>, %arg4: memref<128x128xbf16, #tpu.memory_space<vmem>>, %arg5: memref<1x128xf32, #tpu.memory_space<vmem>>, %arg6: memref<128x128xbf16, #tpu.memory_space<vmem>>, %arg7: memref<1x128xf32, #tpu.memory_space<vmem>>, %arg8: memref<128x128xbf16, #tpu.memory_space<vmem>>, %arg9: memref<1x128xf32, #tpu.memory_space<vmem>>, %arg10: memref<8x128xf32, #tpu.memory_space<vmem>>) attributes {dimension_semantics = [#tpu.dimension_semantics<parallel>], iteration_bounds = array<i64: 1>, scalar_prefetch = 0 : i64, scratch_operands = 0 : i64, tpu.core_type = #tpu.core_type<tc>, window_params = [{transform_indices = @transform_0, window_bounds = array<i64: 8, 16>}, {pipeline_mode = #tpu.pipeline_mode<synchronous>, transform_indices = @transform_1, window_bounds = array<i64: 16, 128>}, {pipeline_mode = #tpu.pipeline_mode<synchronous>, transform_indices = @transform_2, window_bounds = array<i64: 1, 128>}, {pipeline_mode = #tpu.pipeline_mode<synchronous>, transform_indices = @transform_3, window_bounds = array<i64: 128, 128>}, {pipeline_mode = #tpu.pipeline_mode<synchronous>, transform_indices = @transform_4, window_bounds = array<i64: 1, 128>}, {pipeline_mode = #tpu.pipeline_mode<synchronous>, transform_indices = @transform_5, window_bounds = array<i64: 128, 128>}, {pipeline_mode = #tpu.pipeline_mode<synchronous>, transform_indices = @transform_6, window_bounds = array<i64: 1, 128>}, {pipeline_mode = #tpu.pipeline_mode<synchronous>, transform_indices = @transform_7, window_bounds = array<i64: 128, 128>}, {pipeline_mode = #tpu.pipeline_mode<synchronous>, transform_indices = @transform_8, window_bounds = array<i64: 1, 128>}, {transform_indices = @transform_9, window_bounds = array<i64: 8, 128>}]} {
    %c0 = arith.constant 0 : index
    %c0_0 = arith.constant 0 : index
    %0 = vector.load %arg1[%c0, %c0_0] : memref<8x16xf32, #tpu.memory_space<vmem>>, vector<8x16xf32>
    %1 = arith.truncf %0 : vector<8x16xf32> to vector<8x16xbf16>
    %c0_1 = arith.constant 0 : index
    %c0_2 = arith.constant 0 : index
    %2 = vector.load %arg2[%c0_1, %c0_2] : memref<16x128xbf16, #tpu.memory_space<vmem>>, vector<16x128xbf16>
    %cst = arith.constant dense<0.000000e+00> : vector<8x128xf32>
    %3 = tpu.matmul %1, %2, %cst {dimension_numbers = #tpu.dot_dimension_numbers<[1], [0], [0], [1], [0, 0, 1, 1], [], []>} : vector<8x16xbf16>, vector<16x128xbf16>, vector<8x128xf32> -> vector<8x128xf32>
    %c0_3 = arith.constant 0 : index
    %c0_4 = arith.constant 0 : index
    %4 = vector.load %arg3[%c0_3, %c0_4] : memref<1x128xf32, #tpu.memory_space<vmem>>, vector<1x128xf32>
    %5 = vector.broadcast %4 : vector<1x128xf32> to vector<8x128xf32>
    %6 = arith.addf %3, %5 : vector<8x128xf32>
    %cst_5 = arith.constant 0.000000e+00 : f32
    %7 = vector.broadcast %cst_5 : f32 to vector<8x128xf32>
    %8 = arith.maximumf %6, %7 : vector<8x128xf32>
    %9 = arith.truncf %8 : vector<8x128xf32> to vector<8x128xbf16>
    %c0_6 = arith.constant 0 : index
    %c0_7 = arith.constant 0 : index
    %10 = vector.load %arg4[%c0_6, %c0_7] : memref<128x128xbf16, #tpu.memory_space<vmem>>, vector<128x128xbf16>
    %cst_8 = arith.constant dense<0.000000e+00> : vector<8x128xf32>
    %11 = tpu.matmul %9, %10, %cst_8 {dimension_numbers = #tpu.dot_dimension_numbers<[1], [0], [0], [1], [0, 0, 1, 1], [], []>} : vector<8x128xbf16>, vector<128x128xbf16>, vector<8x128xf32> -> vector<8x128xf32>
    %c0_9 = arith.constant 0 : index
    %c0_10 = arith.constant 0 : index
    %12 = vector.load %arg5[%c0_9, %c0_10] : memref<1x128xf32, #tpu.memory_space<vmem>>, vector<1x128xf32>
    %13 = vector.broadcast %12 : vector<1x128xf32> to vector<8x128xf32>
    %14 = arith.addf %11, %13 : vector<8x128xf32>
    %cst_11 = arith.constant 0.000000e+00 : f32
    %15 = vector.broadcast %cst_11 : f32 to vector<8x128xf32>
    %16 = arith.maximumf %14, %15 : vector<8x128xf32>
    %17 = arith.truncf %16 : vector<8x128xf32> to vector<8x128xbf16>
    %c0_12 = arith.constant 0 : index
    %c0_13 = arith.constant 0 : index
    %18 = vector.load %arg6[%c0_12, %c0_13] : memref<128x128xbf16, #tpu.memory_space<vmem>>, vector<128x128xbf16>
    %cst_14 = arith.constant dense<0.000000e+00> : vector<8x128xf32>
    %19 = tpu.matmul %17, %18, %cst_14 {dimension_numbers = #tpu.dot_dimension_numbers<[1], [0], [0], [1], [0, 0, 1, 1], [], []>} : vector<8x128xbf16>, vector<128x128xbf16>, vector<8x128xf32> -> vector<8x128xf32>
    %c0_15 = arith.constant 0 : index
    %c0_16 = arith.constant 0 : index
    %20 = vector.load %arg7[%c0_15, %c0_16] : memref<1x128xf32, #tpu.memory_space<vmem>>, vector<1x128xf32>
    %21 = vector.broadcast %20 : vector<1x128xf32> to vector<8x128xf32>
    %22 = arith.addf %19, %21 : vector<8x128xf32>
    %cst_17 = arith.constant 0.000000e+00 : f32
    %23 = vector.broadcast %cst_17 : f32 to vector<8x128xf32>
    %24 = arith.maximumf %22, %23 : vector<8x128xf32>
    %25 = arith.truncf %24 : vector<8x128xf32> to vector<8x128xbf16>
    %c0_18 = arith.constant 0 : index
    %c0_19 = arith.constant 0 : index
    %26 = vector.load %arg8[%c0_18, %c0_19] : memref<128x128xbf16, #tpu.memory_space<vmem>>, vector<128x128xbf16>
    %cst_20 = arith.constant dense<0.000000e+00> : vector<8x128xf32>
    %27 = tpu.matmul %25, %26, %cst_20 {dimension_numbers = #tpu.dot_dimension_numbers<[1], [0], [0], [1], [0, 0, 1, 1], [], []>} : vector<8x128xbf16>, vector<128x128xbf16>, vector<8x128xf32> -> vector<8x128xf32>
    %c0_21 = arith.constant 0 : index
    %c0_22 = arith.constant 0 : index
    %28 = vector.load %arg9[%c0_21, %c0_22] : memref<1x128xf32, #tpu.memory_space<vmem>>, vector<1x128xf32>
    %29 = vector.broadcast %28 : vector<1x128xf32> to vector<8x128xf32>
    %30 = arith.addf %27, %29 : vector<8x128xf32>
    %cst_23 = arith.constant dense<0xFF800000> : vector<8xf32>
    %31 = vector.multi_reduction <maximumf>, %30, %cst_23 [1] : vector<8x128xf32> to vector<8xf32>
    %32 = vector.shape_cast %31 : vector<8xf32> to vector<8x1xf32>
    %33 = vector.broadcast %32 : vector<8x1xf32> to vector<8x128xf32>
    %34 = arith.subf %30, %33 : vector<8x128xf32>
    %35 = math.exp %34 : vector<8x128xf32>
    %cst_24 = arith.constant dense<0.000000e+00> : vector<8xf32>
    %36 = vector.multi_reduction <add>, %35, %cst_24 [1] : vector<8x128xf32> to vector<8xf32>
    %37 = vector.shape_cast %36 : vector<8xf32> to vector<8x1xf32>
    %38 = vector.broadcast %37 : vector<8x1xf32> to vector<8x128xf32>
    %39 = arith.divf %35, %38 : vector<8x128xf32>
    %c0_25 = arith.constant 0 : index
    %c0_26 = arith.constant 0 : index
    %40 = vector.load %arg10[%c0_25, %c0_26] : memref<8x128xf32, #tpu.memory_space<vmem>>, vector<8x128xf32>
    tpu.vector_store %arg10[%c0_25, %c0_26], %39 {strides = array<i32>} : memref<8x128xf32, #tpu.memory_space<vmem>>, vector<8x128xf32>,
    return
  }
  func.func @transform_0(%arg0: i32) -> (i32, i32) {
    %c0_i32 = arith.constant 0 : i32
    %c0_i32_0 = arith.constant 0 : i32
    return %arg0, %c0_i32 : i32, i32
  }
  func.func @transform_1(%arg0: i32) -> (i32, i32) {
    %c0_i32 = arith.constant 0 : i32
    %c0_i32_0 = arith.constant 0 : i32
    %c0_i32_1 = arith.constant 0 : i32
    return %c0_i32, %c0_i32_0 : i32, i32
  }
  func.func @transform_2(%arg0: i32) -> (i32, i32) {
    %c0_i32 = arith.constant 0 : i32
    %c0_i32_0 = arith.constant 0 : i32
    %c0_i32_1 = arith.constant 0 : i32
    return %c0_i32, %c0_i32_0 : i32, i32
  }
  func.func @transform_3(%arg0: i32) -> (i32, i32) {
    %c0_i32 = arith.constant 0 : i32
    %c0_i32_0 = arith.constant 0 : i32
    %c0_i32_1 = arith.constant 0 : i32
    return %c0_i32, %c0_i32_0 : i32, i32
  }
  func.func @transform_4(%arg0: i32) -> (i32, i32) {
    %c0_i32 = arith.constant 0 : i32
    %c0_i32_0 = arith.constant 0 : i32
    %c0_i32_1 = arith.constant 0 : i32
    return %c0_i32, %c0_i32_0 : i32, i32
  }
  func.func @transform_5(%arg0: i32) -> (i32, i32) {
    %c0_i32 = arith.constant 0 : i32
    %c0_i32_0 = arith.constant 0 : i32
    %c0_i32_1 = arith.constant 0 : i32
    return %c0_i32, %c0_i32_0 : i32, i32
  }
  func.func @transform_6(%arg0: i32) -> (i32, i32) {
    %c0_i32 = arith.constant 0 : i32
    %c0_i32_0 = arith.constant 0 : i32
    %c0_i32_1 = arith.constant 0 : i32
    return %c0_i32, %c0_i32_0 : i32, i32
  }
  func.func @transform_7(%arg0: i32) -> (i32, i32) {
    %c0_i32 = arith.constant 0 : i32
    %c0_i32_0 = arith.constant 0 : i32
    %c0_i32_1 = arith.constant 0 : i32
    return %c0_i32, %c0_i32_0 : i32, i32
  }
  func.func @transform_8(%arg0: i32) -> (i32, i32) {
    %c0_i32 = arith.constant 0 : i32
    %c0_i32_0 = arith.constant 0 : i32
    %c0_i32_1 = arith.constant 0 : i32
    return %c0_i32, %c0_i32_0 : i32, i32
  }
  func.func @transform_9(%arg0: i32) -> (i32, i32) {
    %c0_i32 = arith.constant 0 : i32
    %c0_i32_0 = arith.constant 0 : i32
    return %arg0, %c0_i32 : i32, i32
  }
}

</mosaic_0001>

<bundles_post_ra>
// kernel: mlp_forward.1
= control target key start
LH: loop header
LB: loop body
LE: loop exit
PB: predicated region body
PF: predicated region fallthrough
CT: control target
= control target key end

     0   :  { %14 = vsyncpa [#allocation3], 0  ;;  %s971_s0 = inlined_call_operand.hbm [shape: f32[8,16], index: 0, kind: input, shape index: {}]   ;;  %s972_s1 = inlined_call_operand.vmem [shape: bf16[16,128], index: 1, kind: input, shape index: {}]   ;;  %s973_s2 = inlined_call_operand.vmem [shape: f32[1,128], index: 2, kind: input, shape index: {}]   ;;  %s974_s3 = inlined_call_operand.hbm [shape: bf16[128,128], index: 3, kind: input, shape index: {}]   ;;  %s975_s4 = inlined_call_operand.vmem [shape: f32[1,128], index: 4, kind: input, shape index: {}]   ;;  %s976_s5 = inlined_call_operand.hbm [shape: bf16[128,128], index: 5, kind: input, shape index: {}]   ;;  %s977_s6 = inlined_call_operand.vmem [shape: f32[1,128], index: 6, kind: input, shape index: {}]   ;;  %s978_s7 = inlined_call_operand.hbm [shape: bf16[128,128], index: 7, kind: input, shape index: {}]   ;;  %s979_s8 = inlined_call_operand.vmem [shape: f32[1,128], index: 8, kind: input, shape index: {}]   ;;  %s980_s9 = inlined_call_operand.hbm [shape: f32[8,128], index: 9, kind: output, shape index: {}]  }
   0x1   :  { %15 = vsyncpa [#allocation6], 0 }
   0x2   :  { %16 = vsyncpa [#allocation9], 0 }
   0x3   :  { %17 = vsyncpa [#allocation4], 0  ;;  %s795_s30 = smov [#allocation5]   ;;  %s677_s13 = scalar_lea.hbm %s974_s3, 1024 }
   0x4   :  { %s37_s10 = sshll.u32 %s795_s30, 4  ;;  %p678_p0 = scmp.ne.s32.totalorder %s974_s3, %s677_s13  ;;  %s38_s10 = int_to_ptr.vmem [resolvable:$true] %s37_s10 }
   0x5   :  { %p681_p1 = scmp.lt.u32.totalorder %s677_s13, %s974_s3 }
   0x7   :  { %p683_p2 = pnand %p681_p1, %p678_p0 }
   0x9   :  { %686 = shalt.err (!%p683_p2)
}
   0xa   :  { %s687_s18 = scalar_lea.vmem %s38_s10, 1024  ;;  %p692_p4 = scmp.lt.s32.totalorder %s38_s10, %s38_s10 }
   0xb   :  { %p688_p3 = scmp.ne.s32.totalorder %s38_s10, %s687_s18  ;;  %p693_p5 = scmp.lt.s32.totalorder %s687_s18, %s687_s18 }
   0xd   :  { %p694_p6 = por %p693_p5, %p692_p4 }
   0xf   :  { %p695_p7 = pnand %p694_p6, %p688_p3 }
  0x11   :  { %698 = shalt.err (!%p695_p7)
}
  0x12   :  { %s796_s19 = smov 64   ;;  %s797_s20 = smov 4  }
  0x13   :  { %43 = dma.hbm_to_vmem [thread:$0]  %s974_s3, 1024, %s38_s10, [#allocation6], %s796_s19, %s796_s19, %s797_s20  }
  0x14   :  { %s798_s23 = smov [#allocation2]   ;;  %s799_s25 = smov [#allocation7]  }
  0x15   :  { %s24_s24 = sshll.u32 %s798_s23, 4  ;;  %s51_s26 = sshll.u32 %s799_s25, 4  ;;  %s25_s24 = int_to_ptr.vmem [resolvable:$true] %s24_s24  ;;  %s52_s26 = int_to_ptr.vmem [resolvable:$true] %s51_s26 }
  0x16   :  { %s699_s29 = scalar_lea.hbm %s971_s0, 128 }
  0x17   :  { %p700_p8 = scmp.ne.s32.totalorder %s971_s0, %s699_s29  ;;  %p703_p9 = scmp.lt.u32.totalorder %s699_s29, %s971_s0 }
  0x19   :  { %p705_p10 = pnand %p703_p9, %p700_p8 }
  0x1b   :  { %708 = shalt.err (!%p705_p10)
}
  0x1c   :  { %s709_s3 = scalar_lea.vmem %s25_s24, 128  ;;  %p714_p12 = scmp.lt.s32.totalorder %s25_s24, %s25_s24 }
  0x1d   :  { %p710_p11 = scmp.ne.s32.totalorder %s25_s24, %s709_s3  ;;  %p715_p13 = scmp.lt.s32.totalorder %s709_s3, %s709_s3 }
  0x1f   :  { %p716_p0 = por %p715_p13, %p714_p12 }
  0x21   :  { %p717_p1 = pnand %p716_p0, %p710_p11 }
  0x23   :  { %720 = shalt.err (!%p717_p1)
}
  0x24   :  { %27 = dma.hbm_to_vmem [thread:$0]  %s971_s0, 128, %s25_s24, [#allocation3]  }
  0x25   :  { %s721_s17 = scalar_lea.hbm %s976_s5, 1024 }
  0x26   :  { %p722_p2 = scmp.ne.s32.totalorder %s976_s5, %s721_s17  ;;  %p725_p3 = scmp.lt.u32.totalorder %s721_s17, %s976_s5 }
  0x28   :  { %p727_p4 = pnand %p725_p3, %p722_p2 }
  0x2a   :  { %730 = shalt.err (!%p727_p4)
}
  0x2b   :  { %s731_s25 = scalar_lea.vmem %s52_s26, 1024  ;;  %p736_p6 = scmp.lt.s32.totalorder %s52_s26, %s52_s26 }
  0x2c   :  { %p732_p5 = scmp.ne.s32.totalorder %s52_s26, %s731_s25  ;;  %p737_p7 = scmp.lt.s32.totalorder %s731_s25, %s731_s25 }
  0x2e   :  { %p738_p8 = por %p737_p7, %p736_p6 }
  0x30   :  { %p739_p9 = pnand %p738_p8, %p732_p5 }
  0x32   :  { %742 = shalt.err (!%p739_p9)
}
  0x33   :  { %57 = dma.hbm_to_vmem [thread:$0]  %s976_s5, 1024, %s52_s26, [#allocation6], %s796_s19, %s796_s19, %s797_s20  }
  0x34   :  { %s800_s27 = smov [#allocation8]   ;;  %s743_s11 = scalar_lea.hbm %s978_s7, 1024 }
  0x35   :  { %s65_s28 = sshll.u32 %s800_s27, 4  ;;  %p744_p10 = scmp.ne.s32.totalorder %s978_s7, %s743_s11  ;;  %s66_s28 = int_to_ptr.vmem [resolvable:$true] %s65_s28 }
  0x36   :  { %p747_p11 = scmp.lt.u32.totalorder %s743_s11, %s978_s7 }
  0x38   :  { %p749_p12 = pnand %p747_p11, %p744_p10 }
  0x3a   :  { %752 = shalt.err (!%p749_p12)
}
  0x3b   :  { %s753_s14 = scalar_lea.vmem %s66_s28, 1024  ;;  %p758_p0 = scmp.lt.s32.totalorder %s66_s28, %s66_s28 }
  0x3c   :  { %p754_p13 = scmp.ne.s32.totalorder %s66_s28, %s753_s14  ;;  %p759_p1 = scmp.lt.s32.totalorder %s753_s14, %s753_s14 }
  0x3e   :  { %p760_p2 = por %p759_p1, %p758_p0 }
  0x40   :  { %p761_p3 = pnand %p760_p2, %p754_p13 }
  0x42   :  { %764 = shalt.err (!%p761_p3)
}
  0x43   :  { %71 = dma.hbm_to_vmem [thread:$0]  %s978_s7, 1024, %s66_s28, [#allocation9], %s796_s19, %s796_s19, %s797_s20  }
  0x44   :  { %787 = dma.done.wait [#allocation3], 128  }
  0x45   :  { %788 = vsyncadd [#allocation3], 4294967168 }
  0x46   :  { %789 = dma.done.wait [#allocation6], 2048  }
  0x47   :  { %790 = vsyncadd [#allocation6], 4294965248 }
  0x48   :  { %791 = dma.done.wait [#allocation9], 1024  }
  0x49   :  { %792 = vsyncadd [#allocation9], 4294966272  ;;  %v801_v0 = vmov 0.0   ;;  %vm802_vm0 = vmmov 0   ;;  %v648_v1 = vld [vmem:[%s972_s1] sm:$0xff]   ;;  %vm104_vm1 = vcmask 130048  }
  0x4a   :  { %573 = vmatprep.subr.bf16.mxu0 %v801_v0  ;;  %575 = vmatprep.mubr.msk.bf16.mxu0 %vm802_vm0, %v801_v0  ;;  %v87_v2 = vld [vmem:[#allocation2] sm:$0xff]  ;;  %v649_v4 = vld [vmem:[#allocation5] sm:$0xff]   ;;  %v650_v5 = vld [vmem:[#allocation5 + $0x8] sm:$0xff]  }
  0x4b   :  { %579 = vmatprep.subr.bf16.mxu1 %v801_v0  ;;  %595 = vmatprep.mubr.msk.bf16.mxu1 %vm802_vm0, %v801_v0  ;;  %v88_v3 = vpack.c.bf16 %v87_v2, %v87_v2  ;;  %v651_v6 = vld [vmem:[#allocation5 + $0x10] sm:$0xff]   ;;  %v652_v7 = vld [vmem:[#allocation5 + $0x18] sm:$0xff]   ;;  %v653_v8 = vld [vmem:[#allocation5 + $0x20] sm:$0xff]  }
  0x4c   :  { %574 = vmatpush3.bf16.msra.mxu0 %v648_v1  ;;  %580 = vmatpush3.bf16.msra.mxu1 %v649_v4  ;;  %v654_v9 = vld [vmem:[#allocation5 + $0x28] sm:$0xff]   ;;  %v655_v10 = vld [vmem:[#allocation5 + $0x30] sm:$0xff]   ;;  %v656_v11 = vld [vmem:[#allocation5 + $0x38] sm:$0xff]  }
  0x4d   :  { %599 = vmatprep.subr.bf16.mxu0 %v801_v0  ;;  %581 = vmatprep.subr.bf16.mxu1 %v801_v0  ;;  %v657_v12 = vld [vmem:[#allocation7] sm:$0xff]   ;;  %v658_v13 = vld [vmem:[#allocation7 + $0x8] sm:$0xff]   ;;  %v659_v14 = vld [vmem:[#allocation7 + $0x10] sm:$0xff]  }
  0x4e   :  { %v660_v15 = vld [vmem:[#allocation7 + $0x18] sm:$0xff]   ;;  %v661_v16 = vld [vmem:[#allocation7 + $0x20] sm:$0xff]   ;;  %v662_v17 = vld [vmem:[#allocation7 + $0x28] sm:$0xff]  }
  0x4f   :  { %576 = vmatmul.mubr.msk.bf16.vlgmr.msra.gmra.mrb[0].mxu0 %vm104_vm1, %v88_v3  ;;  %v514_v18 = vld [vmem:[%s973_s2] ss:$0 sm:$0xff]  ;;  %v663_v26 = vld [vmem:[#allocation7 + $0x30] sm:$0xff]   ;;  %v665_v28 = vld [vmem:[#allocation8] sm:$0xff]  }
  0x50   :  { %615 = vmatprep.mubr.msk.bf16.mxu0 %vm802_vm0, %v801_v0  ;;  %582 = vmatpush3.bf16.msra.mxu1 %v650_v5  ;;  %v664_v27 = vld [vmem:[#allocation7 + $0x38] sm:$0xff]   ;;  %v666_v29 = vld [vmem:[#allocation8 + $0x8] sm:$0xff]   ;;  %v667_v30 = vld [vmem:[#allocation8 + $0x10] sm:$0xff]  }
  0x51   :  { %583 = vmatprep.subr.bf16.mxu1 %v801_v0  ;;  %600 = vmatpush3.bf16.msra.mxu0 %v657_v12  ;;  %v668_v31 = vld [vmem:[#allocation8 + $0x18] sm:$0xff]   ;;  %v669_v32 = vld [vmem:[#allocation8 + $0x20] sm:$0xff]   ;;  %v670_v33 = vld [vmem:[#allocation8 + $0x28] sm:$0xff]  }
  0x52   :  { %601 = vmatprep.subr.bf16.mxu0 %v801_v0  ;;  %v517_v34 = vld [vmem:[%s975_s4] ss:$0 sm:$0xff]  ;;  %v671_v42 = vld [vmem:[#allocation8 + $0x30] sm:$0xff]  }
  0x53   :  { %v672_v43 = vld [vmem:[#allocation8 + $0x38] sm:$0xff]  }
  0x54   :  { %584 = vmatpush3.bf16.msra.mxu1 %v651_v6  ;;  %v526_v44 = vld [vmem:[%s977_s6] ss:$0 sm:$0xff]  ;;  %s803_s6 = smov [#allocation10]  }
  0x55   :  { %585 = vmatprep.subr.bf16.mxu1 %v801_v0  ;;  %602 = vmatpush3.bf16.msra.mxu0 %v658_v13  ;;  %v535_v52 = vld [vmem:[%s979_s8] ss:$0 sm:$0xff]  ;;  %s503_s21 = sshll.u32 %s803_s6, 4  ;;  %s504_s21 = int_to_ptr.vmem [resolvable:$true] %s503_s21 }
  0x56   :  { %603 = vmatprep.subr.bf16.mxu0 %v801_v0  ;;  %s765_s8 = scalar_lea.vmem %s504_s21, 128  ;;  %p770_p5 = scmp.lt.s32.totalorder %s504_s21, %s504_s21 }
  0x57   :  { %p766_p4 = scmp.ne.s32.totalorder %s504_s21, %s765_s8  ;;  %p771_p6 = scmp.lt.s32.totalorder %s765_s8, %s765_s8 }
  0x58   :  { %586 = vmatpush3.bf16.msra.mxu1 %v652_v7 }
  0x59   :  { %587 = vmatprep.subr.bf16.mxu1 %v801_v0  ;;  %604 = vmatpush3.bf16.msra.mxu0 %v659_v14  ;;  %p772_p7 = por %p771_p6, %p770_p5 }
  0x5a   :  { %605 = vmatprep.subr.bf16.mxu0 %v801_v0 }
  0x5b   :  { %p773_p8 = pnand %p772_p7, %p766_p4 }
  0x5c   :  { %588 = vmatpush3.bf16.msra.mxu1 %v653_v8 }
  0x5d   :  { %589 = vmatprep.subr.bf16.mxu1 %v801_v0  ;;  %606 = vmatpush3.bf16.msra.mxu0 %v660_v15 }
  0x5e   :  { %607 = vmatprep.subr.bf16.mxu0 %v801_v0 }
  0x60   :  { %590 = vmatpush3.bf16.msra.mxu1 %v654_v9 }
  0x61   :  { %591 = vmatprep.subr.bf16.mxu1 %v801_v0  ;;  %608 = vmatpush3.bf16.msra.mxu0 %v661_v16 }
  0x62   :  { %609 = vmatprep.subr.bf16.mxu0 %v801_v0 }
  0x64   :  { %592 = vmatpush3.bf16.msra.mxu1 %v655_v10 }
  0x65   :  { %593 = vmatprep.subr.bf16.mxu1 %v801_v0  ;;  %610 = vmatpush3.bf16.msra.mxu0 %v662_v17 }
  0x66   :  { %611 = vmatprep.subr.bf16.mxu0 %v801_v0 }
  0x68   :  { %594 = vmatpush3.bf16.msra.mxu1 %v656_v11 }
  0x69   :  { %619 = vmatprep.subr.bf16.mxu1 %v801_v0  ;;  %612 = vmatpush3.bf16.msra.mxu0 %v663_v26 }
  0x6a   :  { %613 = vmatprep.subr.bf16.mxu0 %v801_v0 }
  0x6d   :  { %614 = vmatpush3.bf16.msra.mxu0 %v664_v27 }
 0x122   :  { %v142_v19 = vpop.f32.mrb[0].mxu0 }
 0x123   :  { %v143_v20 = vadd.f32 %v514_v18, %v142_v19  ;;  %v577_v21 = vpop.f32.mrb[1].mxu0 }
 0x124   :  { %v145_v22 = vpop.f32.mrb[2].mxu0 }
 0x125   :  { %v148_v23 = vmax.f32 %v143_v20, 0.0  ;;  %v578_v24 = vpop.f32.mrb[3].mxu0 }
 0x127   :  { %v149_v25 = vpack.c.bf16 %v148_v23, %v148_v23 }
 0x129   :  { %596 = vmatmul.mubr.bf16.vlgmr.msra.gmra.mrb[0].mxu1 %v149_v25 }
 0x12a   :  { %635 = vmatprep.mubr.msk.bf16.mxu1 %vm802_vm0, %v801_v0  ;;  %620 = vmatpush3.bf16.msra.mxu1 %v665_v28 }
 0x12b   :  { %621 = vmatprep.subr.bf16.mxu1 %v801_v0 }
 0x12e   :  { %622 = vmatpush3.bf16.msra.mxu1 %v666_v29 }
 0x12f   :  { %623 = vmatprep.subr.bf16.mxu1 %v801_v0 }
 0x132   :  { %624 = vmatpush3.bf16.msra.mxu1 %v667_v30 }
 0x133   :  { %625 = vmatprep.subr.bf16.mxu1 %v801_v0 }
 0x136   :  { %626 = vmatpush3.bf16.msra.mxu1 %v668_v31 }
 0x137   :  { %627 = vmatprep.subr.bf16.mxu1 %v801_v0 }
 0x13a   :  { %628 = vmatpush3.bf16.msra.mxu1 %v669_v32 }
 0x13b   :  { %629 = vmatprep.subr.bf16.mxu1 %v801_v0 }
 0x13e   :  { %630 = vmatpush3.bf16.msra.mxu1 %v670_v33 }
 0x13f   :  { %631 = vmatprep.subr.bf16.mxu1 %v801_v0 }
 0x142   :  { %632 = vmatpush3.bf16.msra.mxu1 %v671_v42 }
 0x143   :  { %633 = vmatprep.subr.bf16.mxu1 %v801_v0 }
 0x146   :  { %634 = vmatpush3.bf16.msra.mxu1 %v672_v43 }
 0x1fc   :  { %v255_v35 = vpop.f32.mrb[0].mxu1 }
 0x1fd   :  { %v256_v36 = vadd.f32 %v517_v34, %v255_v35  ;;  %v597_v37 = vpop.f32.mrb[1].mxu1 }
 0x1fe   :  { %v258_v38 = vpop.f32.mrb[2].mxu1 }
 0x1ff   :  { %v261_v39 = vmax.f32 %v256_v36, 0.0  ;;  %v598_v40 = vpop.f32.mrb[3].mxu1 }
 0x201   :  { %v262_v41 = vpack.c.bf16 %v261_v39, %v261_v39 }
 0x203   :  { %616 = vmatmul.mubr.bf16.vlgmr.msra.gmra.mrb[4].mxu0 %v262_v41 }
 0x2d6   :  { %v368_v45 = vpop.f32.mrb[4].mxu0 }
 0x2d7   :  { %v369_v46 = vadd.f32 %v526_v44, %v368_v45  ;;  %v617_v47 = vpop.f32.mrb[5].mxu0 }
 0x2d8   :  { %v371_v48 = vpop.f32.mrb[6].mxu0 }
 0x2d9   :  { %v374_v49 = vmax.f32 %v369_v46, 0.0  ;;  %v618_v50 = vpop.f32.mrb[7].mxu0 }
 0x2db   :  { %v375_v51 = vpack.c.bf16 %v374_v49, %v374_v49 }
 0x2dd   :  { %636 = vmatmul.mubr.bf16.vlgmr.msra.gmra.mrb[4].mxu1 %v375_v51 }
 0x3b0   :  { %v481_v53 = vpop.f32.mrb[4].mxu1 }
 0x3b1   :  { %v482_v54 = vadd.f32 %v535_v52, %v481_v53  ;;  %v637_v55 = vpop.f32.mrb[5].mxu1 }
 0x3b2   :  { %v484_v56 = vpop.f32.mrb[6].mxu1 }
 0x3b3   :  { %487 = vmax.xlane.f32.xlu0 %v482_v54  ;;  %v638_v57 = vpop.f32.mrb[7].mxu1 }
 0x440   :  { %v488_v58 = vpop.xlane.xlu0 %487 }
 0x441   :  { %v489_v59 = vsub.f32 %v482_v54, %v488_v58 }
 0x443   :  { %v490_v60 = vmul.f32 1.442695, %v489_v59 }
 0x445   :  { %673 = vpow2.f32 %v490_v60 }
 0x44f   :  { %v674_v61 = vpop.eup %673 }
 0x450   :  { %492 = vadd.xlane.f32.xlu0 %v674_v61 }
 0x4dd   :  { %v493_v62 = vpop.xlane.xlu0 %492 }
 0x4de   :  { %675 = vrcp.f32 %v493_v62 }
 0x4e8   :  { %v676_v63 = vpop.eup %675 }
 0x4e9   :  { %v495_v0 = vmul.f32 %v676_v63, %v674_v61 }
 0x4eb   :  { %496 = vst [vmem:[#allocation10] sm:$0xff] %v495_v0 }
 0x4ec   :  { %776 = shalt.err (!%p773_p8)
}
 0x4ed   :  { %s777_s25 = scalar_lea.hbm %s980_s9, 128 }
 0x4ee   :  { %p778_p9 = scmp.ne.s32.totalorder %s980_s9, %s777_s25  ;;  %p781_p10 = scmp.lt.u32.totalorder %s777_s25, %s980_s9 }
 0x4f0   :  { %p783_p11 = pnand %p781_p10, %p778_p9 }
 0x4f2   :  { %786 = shalt.err (!%p783_p11)
}
 0x4f3   :  { %506 = dma.vmem_to_hbm [thread:$0]  %s504_s21, 128, %s980_s9, [#allocation4]  }
 0x4f4   :  { %793 = dma.done.wait [#allocation4], 128  }
 0x4f5   :  { %794 = vsyncadd [#allocation4], 4294967168 }
 0x4f6   :  { %510 = vsyncpa [#allocation3], 1 }
 0x4f7   :  { %511 = vsyncpa [#allocation6], 1 }
 0x4f8   :  { %512 = vsyncpa [#allocation9], 1 }
 0x4f9   :  { %513 = vsyncpa [#allocation4], 1 }

</bundles_post_ra>
